<compile_context>
chip_gen: v5e
topology: v5e:2x2
jax: 0.10.0
libtpu: 0.0.40
codegen_flags: <defaults>
</compile_context>

<pallas_src>
import functools

import jax
import jax.numpy as jnp
from jax import lax
from jax.experimental import pallas as pl
from jax.experimental.pallas import tpu as pltpu

_LANES = 128   # lane-dense feature width (outputs of every layer, zero padded)
_KPAD = 32     # contraction-dim padding (real in_features are 3 or 20)


def _round_up(n, m):
    return ((n + m - 1) // m) * m


def _linearnet_kernel(x_ref, w_ref, b_ref, out_ref, xpad_ref, *, valid_rows):
    """Whole LinearNet forward.

    x_ref:    (B, 3)         raw input rows (full-extent block, no wrapper pad)
    w_ref:    (6, 32, 128)   [W1, W2, W3, V1, V2, V3], zero padded, f32
    b_ref:    (8, 128)       [b1, b2, b3, c1, c2, c3, 0, 0], zero padded
    out_ref:  (1, 128)       lane-dense scalar row (see header comment)
    xpad_ref: (BP, 128)      VMEM scratch: zero-padded copy of x
    """
    bp = xpad_ref.shape[0]

    # In-kernel zero pad of x (replaces a separate XLA pad kernel + HBM trip).
    xpad_ref[...] = jnp.zeros_like(xpad_ref)
    xpad_ref[0:valid_rows, 0:3] = x_ref[...]
    x = xpad_ref[...]

    def dense(h, k):
        # Contraction trimmed to 32 sublanes: rows 20..31 of every weight are 0.
        return (jnp.dot(h[:, :_KPAD], w_ref[k],
                        preferred_element_type=jnp.float32)
                + b_ref[k:k + 1, :])

    # encoder = enc3(tanh(enc2(tanh(enc1(x)))))
    h = jnp.tanh(dense(x, 0))
    h = jnp.tanh(dense(h, 1))
    enc = dense(h, 2)

    # l2 = lin3(tanh(lin2(tanh(lin1(encoder)))))
    g = jnp.tanh(dense(enc, 3))
    g = jnp.tanh(dense(g, 4))
    l2 = dense(g, 5)

    # loss2_sum = ||l2 - x||_F^2 over valid rows (padded cols are exactly 0,
    # padded rows are not -> mask them if any exist).
    diff = l2 - x
    if valid_rows != bp:
        row_id = lax.broadcasted_iota(jnp.int32, (bp, _LANES), 0)
        diff = jnp.where(row_id < valid_rows, diff, 0.0)
    loss2 = jnp.sum(diff * diff)

    lane = lax.broadcasted_iota(jnp.int32, (1, _LANES), 1)

    # Scalars from encoder row 0 and x row 0 via masked reductions
    # (no single-element lane extracts).
    e_row = enc[0:1, :]
    e00 = jnp.sum(jnp.where(lane == 0, e_row, 0.0))
    e01 = jnp.sum(jnp.where(lane == 1, e_row, 0.0))
    e02 = jnp.sum(jnp.where(lane == 2, e_row, 0.0))

    x_row = x[0:1, :]
    ge_x = jnp.sum(jnp.where(lane == 2, x_row, 0.0))

    loss_re = (100.0 * jnp.abs(e02 * e02)
               + 100.0 * jnp.abs((e00 * e00 + e01 * e01) ** 2
                                 - 0.01 * (e00 * e00 - e01 * e01)))
    loss = loss_re + loss2

    # Single lane-dense (1, 128) store with every returned scalar already
    # computed in-kernel.
    out = jnp.where(lane == 0, loss,
          jnp.where(lane == 1, e00,
          jnp.where(lane == 2, ge_x,
          jnp.where(lane == 3, e01,
          jnp.where(lane == 4, loss2 / 50.0,
          jnp.where(lane == 5, loss2,
          jnp.where(lane == 6, loss_re, 0.0)))))))
    out_ref[...] = out


def _torch_linear_init(key, in_f, out_f):
    """PyTorch-default-like Linear init: U(-1/sqrt(fan_in), +1/sqrt(fan_in))."""
    kw, kb = jax.random.split(key)
    bound = 1.0 / jnp.sqrt(jnp.float32(in_f))
    w = jax.random.uniform(kw, (in_f, out_f), jnp.float32, -bound, bound)  # [in, out]
    b = jax.random.uniform(kb, (1, out_f), jnp.float32, -bound, bound)
    return w, b


def init_params(seed=0):
    key = jax.random.PRNGKey(seed)
    keys = jax.random.split(key, 6)
    w1, b1 = _torch_linear_init(keys[0], 3, 20)    # encoder1_1
    w2, b2 = _torch_linear_init(keys[1], 20, 20)   # encoder1_2
    w3, b3 = _torch_linear_init(keys[2], 20, 3)    # encoder1_3
    v1, c1 = _torch_linear_init(keys[3], 3, 20)    # linear_x_1
    v2, c2 = _torch_linear_init(keys[4], 20, 20)   # linear_x_2
    v3, c3 = _torch_linear_init(keys[5], 20, 3)    # linear_x_3
    return (w1, b1, w2, b2, w3, b3, v1, c1, v2, c2, v3, c3)


def pack_params(params):
    """Pack the 12 Linear params into one (6,32,128) weight slab and one
    (8,128) bias slab.  Done once, outside the hot path."""
    (w1, b1, w2, b2, w3, b3, v1, c1, v2, c2, v3, c3) = params

    def pad_w(w):
        out = jnp.zeros((_KPAD, _LANES), jnp.float32)
        return out.at[: w.shape[0], : w.shape[1]].set(w)

    def pad_b(b):
        b = b.reshape(-1)
        out = jnp.zeros((_LANES,), jnp.float32)
        return out.at[: b.shape[0]].set(b)

    w_slab = jnp.stack([pad_w(w) for w in (w1, w2, w3, v1, v2, v3)])  # (6,32,128) = 96 KiB
    b_rows = [pad_b(b) for b in (b1, b2, b3, c1, c2, c3)]
    b_rows += [jnp.zeros((_LANES,), jnp.float32)] * 2                 # pad to 8 rows
    b_slab = jnp.stack(b_rows)                                        # (8,128)
    return w_slab, b_slab


def linearnet_forward(x, u0, packed_params):
    """Replicates LinearNet.forward. `u0` is unused by the PyTorch module."""
    del u0  # unused in the reference forward pass
    w_slab, b_slab = packed_params
    B = x.shape[0]
    assert B >= 1, "forward reads encoder[0, :] and x[0, 2]; need at least one row"
    BP = max(8, _round_up(B, 8))

    x32 = x.astype(jnp.float32)

    vmem = pl.BlockSpec(memory_space=pltpu.MemorySpace.VMEM)
    out_row = pl.pallas_call(
        functools.partial(_linearnet_kernel, valid_rows=B),
        out_shape=jax.ShapeDtypeStruct((1, _LANES), jnp.float32),
        in_specs=[vmem, vmem, vmem],
        out_specs=vmem,
        scratch_shapes=[pltpu.VMEM((BP, _LANES), jnp.float32)],
    )(x32, w_slab, b_slab)

    loss = out_row[0, 0]
    ge_z1 = out_row[0, 1]
    ge_x = out_row[0, 2]
    ge_z2 = out_row[0, 3]
    loss2_over_50 = out_row[0, 4]
    return (loss, ge_z1, ge_x, ge_z2, loss2_over_50)


def _reference_forward(x, params):
    """Pure-JAX reference for a correctness cross-check."""
    (w1, b1, w2, b2, w3, b3, v1, c1, v2, c2, v3, c3) = params
    h = jnp.tanh(x @ w1 + b1)
    h = jnp.tanh(h @ w2 + b2)
    enc = h @ w3 + b3
    g = jnp.tanh(enc @ v1 + c1)
    g = jnp.tanh(g @ v2 + c2)
    l2 = g @ v3 + c3
    loss2 = jnp.sum((l2 - x) ** 2)
    e00, e01, e02 = enc[0, 0], enc[0, 1], enc[0, 2]
    loss_re = (jnp.abs(e02 ** 2) * 100.0
               + jnp.abs((e00 ** 2 + e01 ** 2) ** 2
                         - 0.01 * (e00 ** 2 - e01 ** 2)) * 100.0)
    return loss_re + loss2, enc, loss2


if __name__ == "__main__":
    key = jax.random.PRNGKey(0)
    kx, ku = jax.random.split(key)
    B = 8
    x = jax.random.normal(kx, (B, 3), jnp.float32)
    u0 = jax.random.normal(ku, (B, 3), jnp.float32)   # unused by the module

    params = init_params(seed=0)
    packed = pack_params(params)          # pack once, outside the hot path

    fwd = jax.jit(linearnet_forward)
    outs = jax.block_until_ready(fwd(x, u0, packed))
    loss, ge_z1, ge_x, ge_z2, loss2_over_50 = outs

    # Cross-check against the pure-JAX reference.
    ref_loss, ref_enc, ref_loss2 = _reference_forward(x, params)
    assert jnp.allclose(loss, ref_loss, rtol=1e-4, atol=1e-4)
    assert jnp.allclose(ge_z1, ref_enc[0, 0], rtol=1e-4, atol=1e-5)
    assert jnp.allclose(ge_z2, ref_enc[0, 1], rtol=1e-4, atol=1e-5)
    assert jnp.allclose(ge_x, x[0, 2])
    assert jnp.allclose(loss2_over_50, ref_loss2 / 50.0, rtol=1e-4, atol=1e-5)

    print("KERNEL_OK")
</pallas_src>

<mosaic_0001>
module attributes {stable_mosaic.version = 11 : i64} {
  func.func @_linearnet_kernel(%arg0: memref<8x3xf32, #tpu.memory_space<vmem>>, %arg1: memref<6x32x128xf32, #tpu.memory_space<vmem>>, %arg2: memref<8x128xf32, #tpu.memory_space<vmem>>, %arg3: memref<1x128xf32, #tpu.memory_space<vmem>>, %arg4: memref<8x128xf32, #tpu.memory_space<vmem>>) attributes {dimension_semantics = [], scalar_prefetch = 0 : i64, scratch_operands = 1 : i64, tpu.core_type = #tpu.core_type<tc>} {
    %cst = arith.constant 0.000000e+00 : f32
    %0 = vector.broadcast %cst : f32 to vector<8x128xf32>
    %c0 = arith.constant 0 : index
    %c0_0 = arith.constant 0 : index
    %1 = vector.load %arg4[%c0, %c0_0] : memref<8x128xf32, #tpu.memory_space<vmem>>, vector<8x128xf32>
    tpu.vector_store %arg4[%c0, %c0_0], %0 {strides = array<i32>} : memref<8x128xf32, #tpu.memory_space<vmem>>, vector<8x128xf32>,
    %c0_1 = arith.constant 0 : index
    %c0_2 = arith.constant 0 : index
    %2 = vector.load %arg0[%c0_1, %c0_2] : memref<8x3xf32, #tpu.memory_space<vmem>>, vector<8x3xf32>
    %c0_3 = arith.constant 0 : index
    %c0_4 = arith.constant 0 : index
    %3 = vector.load %arg4[%c0_3, %c0_4] : memref<8x128xf32, #tpu.memory_space<vmem>>, vector<8x3xf32>
    tpu.vector_store %arg4[%c0_3, %c0_4], %2 {strides = array<i32>} : memref<8x128xf32, #tpu.memory_space<vmem>>, vector<8x3xf32>,
    %c0_5 = arith.constant 0 : index
    %c0_6 = arith.constant 0 : index
    %4 = vector.load %arg4[%c0_5, %c0_6] : memref<8x128xf32, #tpu.memory_space<vmem>>, vector<8x128xf32>
    %5 = vector.extract_strided_slice %4 {offsets = [0, 0], sizes = [8, 32], strides = [1, 1]} : vector<8x128xf32> to vector<8x32xf32>
    %c0_7 = arith.constant 0 : index
    %c0_8 = arith.constant 0 : index
    %c0_9 = arith.constant 0 : index
    %6 = vector.load %arg1[%c0_7, %c0_8, %c0_9] : memref<6x32x128xf32, #tpu.memory_space<vmem>>, vector<1x32x128xf32>
    %7 = vector.shape_cast %6 : vector<1x32x128xf32> to vector<32x128xf32>
    %cst_10 = arith.constant dense<0.000000e+00> : vector<8x128xf32>
    %8 = tpu.matmul %5, %7, %cst_10 {dimension_numbers = #tpu.dot_dimension_numbers<[1], [0], [0], [1], [0, 0, 1, 1], [], []>} : vector<8x32xf32>, vector<32x128xf32>, vector<8x128xf32> -> vector<8x128xf32>
    %c0_11 = arith.constant 0 : index
    %c0_12 = arith.constant 0 : index
    %9 = vector.load %arg2[%c0_11, %c0_12] : memref<8x128xf32, #tpu.memory_space<vmem>>, vector<1x128xf32>
    %10 = vector.broadcast %9 : vector<1x128xf32> to vector<8x128xf32>
    %11 = arith.addf %8, %10 : vector<8x128xf32>
    %12 = math.tanh %11 : vector<8x128xf32>
    %13 = vector.extract_strided_slice %12 {offsets = [0, 0], sizes = [8, 32], strides = [1, 1]} : vector<8x128xf32> to vector<8x32xf32>
    %c1 = arith.constant 1 : index
    %c0_13 = arith.constant 0 : index
    %c0_14 = arith.constant 0 : index
    %14 = vector.load %arg1[%c1, %c0_13, %c0_14] : memref<6x32x128xf32, #tpu.memory_space<vmem>>, vector<1x32x128xf32>
    %15 = vector.shape_cast %14 : vector<1x32x128xf32> to vector<32x128xf32>
    %cst_15 = arith.constant dense<0.000000e+00> : vector<8x128xf32>
    %16 = tpu.matmul %13, %15, %cst_15 {dimension_numbers = #tpu.dot_dimension_numbers<[1], [0], [0], [1], [0, 0, 1, 1], [], []>} : vector<8x32xf32>, vector<32x128xf32>, vector<8x128xf32> -> vector<8x128xf32>
    %c1_16 = arith.constant 1 : index
    %c0_17 = arith.constant 0 : index
    %17 = vector.load %arg2[%c1_16, %c0_17] : memref<8x128xf32, #tpu.memory_space<vmem>>, vector<1x128xf32>
    %18 = vector.broadcast %17 : vector<1x128xf32> to vector<8x128xf32>
    %19 = arith.addf %16, %18 : vector<8x128xf32>
    %20 = math.tanh %19 : vector<8x128xf32>
    %21 = vector.extract_strided_slice %20 {offsets = [0, 0], sizes = [8, 32], strides = [1, 1]} : vector<8x128xf32> to vector<8x32xf32>
    %c2 = arith.constant 2 : index
    %c0_18 = arith.constant 0 : index
    %c0_19 = arith.constant 0 : index
    %22 = vector.load %arg1[%c2, %c0_18, %c0_19] : memref<6x32x128xf32, #tpu.memory_space<vmem>>, vector<1x32x128xf32>
    %23 = vector.shape_cast %22 : vector<1x32x128xf32> to vector<32x128xf32>
    %cst_20 = arith.constant dense<0.000000e+00> : vector<8x128xf32>
    %24 = tpu.matmul %21, %23, %cst_20 {dimension_numbers = #tpu.dot_dimension_numbers<[1], [0], [0], [1], [0, 0, 1, 1], [], []>} : vector<8x32xf32>, vector<32x128xf32>, vector<8x128xf32> -> vector<8x128xf32>
    %c2_21 = arith.constant 2 : index
    %c0_22 = arith.constant 0 : index
    %25 = vector.load %arg2[%c2_21, %c0_22] : memref<8x128xf32, #tpu.memory_space<vmem>>, vector<1x128xf32>
    %26 = vector.broadcast %25 : vector<1x128xf32> to vector<8x128xf32>
    %27 = arith.addf %24, %26 : vector<8x128xf32>
    %28 = vector.extract_strided_slice %27 {offsets = [0, 0], sizes = [8, 32], strides = [1, 1]} : vector<8x128xf32> to vector<8x32xf32>
    %c3 = arith.constant 3 : index
    %c0_23 = arith.constant 0 : index
    %c0_24 = arith.constant 0 : index
    %29 = vector.load %arg1[%c3, %c0_23, %c0_24] : memref<6x32x128xf32, #tpu.memory_space<vmem>>, vector<1x32x128xf32>
    %30 = vector.shape_cast %29 : vector<1x32x128xf32> to vector<32x128xf32>
    %cst_25 = arith.constant dense<0.000000e+00> : vector<8x128xf32>
    %31 = tpu.matmul %28, %30, %cst_25 {dimension_numbers = #tpu.dot_dimension_numbers<[1], [0], [0], [1], [0, 0, 1, 1], [], []>} : vector<8x32xf32>, vector<32x128xf32>, vector<8x128xf32> -> vector<8x128xf32>
    %c3_26 = arith.constant 3 : index
    %c0_27 = arith.constant 0 : index
    %32 = vector.load %arg2[%c3_26, %c0_27] : memref<8x128xf32, #tpu.memory_space<vmem>>, vector<1x128xf32>
    %33 = vector.broadcast %32 : vector<1x128xf32> to vector<8x128xf32>
    %34 = arith.addf %31, %33 : vector<8x128xf32>
    %35 = math.tanh %34 : vector<8x128xf32>
    %36 = vector.extract_strided_slice %35 {offsets = [0, 0], sizes = [8, 32], strides = [1, 1]} : vector<8x128xf32> to vector<8x32xf32>
    %c4 = arith.constant 4 : index
    %c0_28 = arith.constant 0 : index
    %c0_29 = arith.constant 0 : index
    %37 = vector.load %arg1[%c4, %c0_28, %c0_29] : memref<6x32x128xf32, #tpu.memory_space<vmem>>, vector<1x32x128xf32>
    %38 = vector.shape_cast %37 : vector<1x32x128xf32> to vector<32x128xf32>
    %cst_30 = arith.constant dense<0.000000e+00> : vector<8x128xf32>
    %39 = tpu.matmul %36, %38, %cst_30 {dimension_numbers = #tpu.dot_dimension_numbers<[1], [0], [0], [1], [0, 0, 1, 1], [], []>} : vector<8x32xf32>, vector<32x128xf32>, vector<8x128xf32> -> vector<8x128xf32>
    %c4_31 = arith.constant 4 : index
    %c0_32 = arith.constant 0 : index
    %40 = vector.load %arg2[%c4_31, %c0_32] : memref<8x128xf32, #tpu.memory_space<vmem>>, vector<1x128xf32>
    %41 = vector.broadcast %40 : vector<1x128xf32> to vector<8x128xf32>
    %42 = arith.addf %39, %41 : vector<8x128xf32>
    %43 = math.tanh %42 : vector<8x128xf32>
    %44 = vector.extract_strided_slice %43 {offsets = [0, 0], sizes = [8, 32], strides = [1, 1]} : vector<8x128xf32> to vector<8x32xf32>
    %c5 = arith.constant 5 : index
    %c0_33 = arith.constant 0 : index
    %c0_34 = arith.constant 0 : index
    %45 = vector.load %arg1[%c5, %c0_33, %c0_34] : memref<6x32x128xf32, #tpu.memory_space<vmem>>, vector<1x32x128xf32>
    %46 = vector.shape_cast %45 : vector<1x32x128xf32> to vector<32x128xf32>
    %cst_35 = arith.constant dense<0.000000e+00> : vector<8x128xf32>
    %47 = tpu.matmul %44, %46, %cst_35 {dimension_numbers = #tpu.dot_dimension_numbers<[1], [0], [0], [1], [0, 0, 1, 1], [], []>} : vector<8x32xf32>, vector<32x128xf32>, vector<8x128xf32> -> vector<8x128xf32>
    %c5_36 = arith.constant 5 : index
    %c0_37 = arith.constant 0 : index
    %48 = vector.load %arg2[%c5_36, %c0_37] : memref<8x128xf32, #tpu.memory_space<vmem>>, vector<1x128xf32>
    %49 = vector.broadcast %48 : vector<1x128xf32> to vector<8x128xf32>
    %50 = arith.addf %47, %49 : vector<8x128xf32>
    %51 = arith.subf %50, %4 : vector<8x128xf32>
    %52 = arith.mulf %51, %51 : vector<8x128xf32>
    %53 = vector.shape_cast %52 : vector<8x128xf32> to vector<1x8x128xf32>
    %cst_38 = arith.constant dense<0.000000e+00> : vector<1xf32>
    %54 = vector.multi_reduction <add>, %53, %cst_38 [1, 2] : vector<1x8x128xf32> to vector<1xf32>
    %55 = vector.shape_cast %54 : vector<1xf32> to vector<1x1x1xf32>
    %56 = vector.extract %55[0, 0, 0] : f32 from vector<1x1x1xf32>
    %57 = tpu.iota {dimensions = array<i32: 1>} : vector<1x128xi32>
    %58 = vector.extract_strided_slice %27 {offsets = [0, 0], sizes = [1, 128], strides = [1, 1]} : vector<8x128xf32> to vector<1x128xf32>
    %c0_i32 = arith.constant 0 : i32
    %59 = vector.broadcast %c0_i32 : i32 to vector<1x128xi32>
    %60 = arith.cmpi eq, %57, %59 : vector<1x128xi32>
    %cst_39 = arith.constant 0.000000e+00 : f32
    %61 = vector.broadcast %cst_39 : f32 to vector<1x128xf32>
    %62 = arith.select %60, %58, %61 : vector<1x128xi1>, vector<1x128xf32>
    %63 = vector.shape_cast %62 : vector<1x128xf32> to vector<1x1x128xf32>
    %cst_40 = arith.constant dense<0.000000e+00> : vector<1xf32>
    %64 = vector.multi_reduction <add>, %63, %cst_40 [1, 2] : vector<1x1x128xf32> to vector<1xf32>
    %65 = vector.shape_cast %64 : vector<1xf32> to vector<1x1x1xf32>
    %66 = vector.extract %65[0, 0, 0] : f32 from vector<1x1x1xf32>
    %c1_i32 = arith.constant 1 : i32
    %67 = vector.broadcast %c1_i32 : i32 to vector<1x128xi32>
    %68 = arith.cmpi eq, %57, %67 : vector<1x128xi32>
    %cst_41 = arith.constant 0.000000e+00 : f32
    %69 = vector.broadcast %cst_41 : f32 to vector<1x128xf32>
    %70 = arith.select %68, %58, %69 : vector<1x128xi1>, vector<1x128xf32>
    %71 = vector.shape_cast %70 : vector<1x128xf32> to vector<1x1x128xf32>
    %cst_42 = arith.constant dense<0.000000e+00> : vector<1xf32>
    %72 = vector.multi_reduction <add>, %71, %cst_42 [1, 2] : vector<1x1x128xf32> to vector<1xf32>
    %73 = vector.shape_cast %72 : vector<1xf32> to vector<1x1x1xf32>
    %74 = vector.extract %73[0, 0, 0] : f32 from vector<1x1x1xf32>
    %c2_i32 = arith.constant 2 : i32
    %75 = vector.broadcast %c2_i32 : i32 to vector<1x128xi32>
    %76 = arith.cmpi eq, %57, %75 : vector<1x128xi32>
    %cst_43 = arith.constant 0.000000e+00 : f32
    %77 = vector.broadcast %cst_43 : f32 to vector<1x128xf32>
    %78 = arith.select %76, %58, %77 : vector<1x128xi1>, vector<1x128xf32>
    %79 = vector.shape_cast %78 : vector<1x128xf32> to vector<1x1x128xf32>
    %cst_44 = arith.constant dense<0.000000e+00> : vector<1xf32>
    %80 = vector.multi_reduction <add>, %79, %cst_44 [1, 2] : vector<1x1x128xf32> to vector<1xf32>
    %81 = vector.shape_cast %80 : vector<1xf32> to vector<1x1x1xf32>
    %82 = vector.extract %81[0, 0, 0] : f32 from vector<1x1x1xf32>
    %83 = vector.extract_strided_slice %4 {offsets = [0, 0], sizes = [1, 128], strides = [1, 1]} : vector<8x128xf32> to vector<1x128xf32>
    %c2_i32_45 = arith.constant 2 : i32
    %84 = vector.broadcast %c2_i32_45 : i32 to vector<1x128xi32>
    %85 = arith.cmpi eq, %57, %84 : vector<1x128xi32>
    %cst_46 = arith.constant 0.000000e+00 : f32
    %86 = vector.broadcast %cst_46 : f32 to vector<1x128xf32>
    %87 = arith.select %85, %83, %86 : vector<1x128xi1>, vector<1x128xf32>
    %88 = vector.shape_cast %87 : vector<1x128xf32> to vector<1x1x128xf32>
    %cst_47 = arith.constant dense<0.000000e+00> : vector<1xf32>
    %89 = vector.multi_reduction <add>, %88, %cst_47 [1, 2] : vector<1x1x128xf32> to vector<1xf32>
    %90 = vector.shape_cast %89 : vector<1xf32> to vector<1x1x1xf32>
    %91 = vector.extract %90[0, 0, 0] : f32 from vector<1x1x1xf32>
    %92 = arith.mulf %82, %82 : f32
    %93 = math.absf %92 : f32
    %cst_48 = arith.constant 1.000000e+02 : f32
    %94 = arith.mulf %cst_48, %93 : f32
    %95 = arith.mulf %66, %66 : f32
    %96 = arith.mulf %74, %74 : f32
    %97 = arith.addf %95, %96 : f32
    %98 = arith.mulf %97, %97 : f32
    %99 = arith.mulf %66, %66 : f32
    %100 = arith.mulf %74, %74 : f32
    %101 = arith.subf %99, %100 : f32
    %cst_49 = arith.constant 0.00999999977 : f32
    %102 = arith.mulf %cst_49, %101 : f32
    %103 = arith.subf %98, %102 : f32
    %104 = math.absf %103 : f32
    %cst_50 = arith.constant 1.000000e+02 : f32
    %105 = arith.mulf %cst_50, %104 : f32
    %106 = arith.addf %94, %105 : f32
    %107 = arith.addf %106, %56 : f32
    %c0_i32_51 = arith.constant 0 : i32
    %108 = vector.broadcast %c0_i32_51 : i32 to vector<1x128xi32>
    %109 = arith.cmpi eq, %57, %108 : vector<1x128xi32>
    %c1_i32_52 = arith.constant 1 : i32
    %110 = vector.broadcast %c1_i32_52 : i32 to vector<1x128xi32>
    %111 = arith.cmpi eq, %57, %110 : vector<1x128xi32>
    %c2_i32_53 = arith.constant 2 : i32
    %112 = vector.broadcast %c2_i32_53 : i32 to vector<1x128xi32>
    %113 = arith.cmpi eq, %57, %112 : vector<1x128xi32>
    %c3_i32 = arith.constant 3 : i32
    %114 = vector.broadcast %c3_i32 : i32 to vector<1x128xi32>
    %115 = arith.cmpi eq, %57, %114 : vector<1x128xi32>
    %c4_i32 = arith.constant 4 : i32
    %116 = vector.broadcast %c4_i32 : i32 to vector<1x128xi32>
    %117 = arith.cmpi eq, %57, %116 : vector<1x128xi32>
    %cst_54 = arith.constant 5.000000e+01 : f32
    %118 = arith.divf %56, %cst_54 : f32
    %c5_i32 = arith.constant 5 : i32
    %119 = vector.broadcast %c5_i32 : i32 to vector<1x128xi32>
    %120 = arith.cmpi eq, %57, %119 : vector<1x128xi32>
    %c6_i32 = arith.constant 6 : i32
    %121 = vector.broadcast %c6_i32 : i32 to vector<1x128xi32>
    %122 = arith.cmpi eq, %57, %121 : vector<1x128xi32>
    %cst_55 = arith.constant 0.000000e+00 : f32
    %123 = vector.broadcast %106 : f32 to vector<1x128xf32>
    %124 = vector.broadcast %cst_55 : f32 to vector<1x128xf32>
    %125 = arith.select %122, %123, %124 : vector<1x128xi1>, vector<1x128xf32>
    %126 = vector.broadcast %56 : f32 to vector<1x128xf32>
    %127 = arith.select %120, %126, %125 : vector<1x128xi1>, vector<1x128xf32>
    %128 = vector.broadcast %118 : f32 to vector<1x128xf32>
    %129 = arith.select %117, %128, %127 : vector<1x128xi1>, vector<1x128xf32>
    %130 = vector.broadcast %74 : f32 to vector<1x128xf32>
    %131 = arith.select %115, %130, %129 : vector<1x128xi1>, vector<1x128xf32>
    %132 = vector.broadcast %91 : f32 to vector<1x128xf32>
    %133 = arith.select %113, %132, %131 : vector<1x128xi1>, vector<1x128xf32>
    %134 = vector.broadcast %66 : f32 to vector<1x128xf32>
    %135 = arith.select %111, %134, %133 : vector<1x128xi1>, vector<1x128xf32>
    %136 = vector.broadcast %107 : f32 to vector<1x128xf32>
    %137 = arith.select %109, %136, %135 : vector<1x128xi1>, vector<1x128xf32>
    %c0_56 = arith.constant 0 : index
    %c0_57 = arith.constant 0 : index
    %138 = vector.load %arg3[%c0_56, %c0_57] : memref<1x128xf32, #tpu.memory_space<vmem>>, vector<1x128xf32>
    tpu.vector_store %arg3[%c0_56, %c0_57], %137 {strides = array<i32>} : memref<1x128xf32, #tpu.memory_space<vmem>>, vector<1x128xf32>,
    return
  }
}

</mosaic_0001>

<bundles_post_ra>
// kernel: linearnet_forward.1
= control target key start
LH: loop header
LB: loop body
LE: loop exit
PB: predicated region body
PF: predicated region fallthrough
CT: control target
= control target key end

     0   :  { %8 = vsyncpa [#allocation4], 0  ;;  %s392_s15 = smov [#allocation3]   ;;  %s393_s17 = smov 128   ;;  %s497_s0 = inlined_call_operand.vmem [shape: f32[8,3], index: 0, kind: input, shape index: {}]   ;;  %s498_s1 = inlined_call_operand.hbm [shape: f32[6,32,128], index: 1, kind: input, shape index: {}]   ;;  %s499_s2 = inlined_call_operand.vmem [shape: f32[8,128], index: 2, kind: input, shape index: {}]   ;;  %s500_s3 = inlined_call_operand.vmem [shape: f32[1,128], index: 3, kind: output, shape index: {}]  }
   0x1   :  { %s15_s14 = sshll.u32 %s498_s1, 4  ;;  %s17_s16 = sshll.u32 %s392_s15, 4  ;;  %s16_s14 = int_to_ptr.hbm [resolvable:$true] %s15_s14  ;;  %s18_s16 = int_to_ptr.vmem [resolvable:$true] %s17_s16 }
   0x2   :  { %s394_s18 = smov 8  }
   0x3   :  { %23 = dma.hbm_to_vmem [thread:$0]  %s16_s14, 3072, %s18_s16, [#allocation4], %s393_s17, %s393_s17, %s394_s18  }
   0x4   :  { %390 = dma.done.wait [#allocation4], 3072  }
   0x5   :  { %391 = vsyncadd [#allocation4], 4294964224  ;;  %v395_v0 = vmov 0.0   ;;  %vm32_vm0 = vcmask 23552   ;;  %v38_v1 = vld [vmem:[#allocation3 + $0x18] sm:$0xff]  ;;  %v37_v2 = vld [vmem:[#allocation3 + $0x10] sm:$0xff]  ;;  %v230_v27 = vlaneseq }
   0x6   :  { %30 = vst [vmem:[#allocation2] sm:$0xff] %v395_v0  ;;  %57 = vmatpush.msra.mxu0 %v38_v1  ;;  %v31_v3 = vld [vmem:[%s497_s0] sm:$0xff]  ;;  %v36_v4 = vld [vmem:[#allocation3 + $0x8] sm:$0xff]  ;;  %v35_v5 = vld [vmem:[#allocation3] sm:$0xff]  ;;  %vm41_vm1 = vcmask 261120   ;;  %vm234_vm3 = vcmask 1040384  }
   0x7   :  { %33 = vst.msk [vmem:[#allocation2] sm:$0xff] %vm32_vm0, %v31_v3  ;;  %v70_v7 = vld [vmem:[#allocation3 + $0x38] sm:$0xff]  ;;  %v69_v8 = vld [vmem:[#allocation3 + $0x30] sm:$0xff]  ;;  %v68_v9 = vld [vmem:[#allocation3 + $0x28] sm:$0xff]  ;;  %v435_v28 = vand.u32 127, %v230_v27  ;;  %v396_v63 = vmov 50.0  }
   0x8   :  { %58 = vmatpush.msra.mxu0 %v37_v2  ;;  %88 = vmatpush.msra.mxu1 %v70_v7  ;;  %v67_v10 = vld [vmem:[#allocation3 + $0x20] sm:$0xff]  ;;  %v350_v11 = vld [vmem:[%s499_s2] ss:$0 sm:$0xff]  ;;  %v100_v16 = vld [vmem:[#allocation3 + $0x50] sm:$0xff] }
   0x9   :  { %v101_v15 = vld [vmem:[#allocation3 + $0x58] sm:$0xff]  ;;  %v99_v17 = vld [vmem:[#allocation3 + $0x48] sm:$0xff]  ;;  %v98_v18 = vld [vmem:[#allocation3 + $0x40] sm:$0xff]  ;;  %vm245_vm2 = vcmp.eq.s32.totalorder %v435_v28, 1  ;;  %vm257_vm4 = vcmp.eq.s32.totalorder %v435_v28, 2  ;;  %vm232_vm5 = vcmp.eq.s32.totalorder %v435_v28, 0 }
   0xa   :  { %59 = vmatpush.msra.mxu0 %v36_v4  ;;  %89 = vmatpush.msra.mxu1 %v69_v8  ;;  %v131_v19 = vld [vmem:[#allocation3 + $0x78] sm:$0xff]  ;;  %v130_v20 = vld [vmem:[#allocation3 + $0x70] sm:$0xff]  ;;  %v129_v25 = vld [vmem:[#allocation3 + $0x68] sm:$0xff]  ;;  %vm306_vm7 = vcmp.eq.s32.totalorder %v435_v28, 6  ;;  %vm305_vm8 = vcmp.eq.s32.totalorder %v435_v28, 5  ;;  %vm295_vm9 = vcmp.eq.s32.totalorder %v435_v28, 4 }
   0xb   :  { %119 = vmatpush.msra.mxu2 %v101_v15  ;;  %149 = vmatpush.msra.mxu3 %v131_v19  ;;  %v351_v21 = vld [vmem:[%s499_s2 + $0x1] ss:$0 sm:$0xff]  ;;  %v128_v26 = vld [vmem:[#allocation3 + $0x60] sm:$0xff]  ;;  %v352_v29 = vld [vmem:[%s499_s2 + $0x2] ss:$0 sm:$0xff]  ;;  %vm294_vm10 = vcmp.eq.s32.totalorder %v435_v28, 3 }
   0xc   :  { %60 = vmatpush.msra.mxu0 %v35_v5  ;;  %90 = vmatpush.msra.mxu1 %v68_v9  ;;  %v162_v36 = vld [vmem:[#allocation3 + $0x98] sm:$0xff]  ;;  %v161_v37 = vld [vmem:[#allocation3 + $0x90] sm:$0xff]  ;;  %v160_v38 = vld [vmem:[#allocation3 + $0x88] sm:$0xff] }
   0xd   :  { %120 = vmatpush.msra.mxu2 %v100_v16  ;;  %150 = vmatpush.msra.mxu3 %v130_v20  ;;  %v159_v39 = vld [vmem:[#allocation3 + $0x80] sm:$0xff]  ;;  %v353_v40 = vld [vmem:[%s499_s2 + $0x3] ss:$0 sm:$0xff]  ;;  %v192_v45 = vld [vmem:[#allocation3 + $0xb0] sm:$0xff] }
   0xe   :  { %v423_v6 = vld [vmem:[#allocation2] sm:$0xff]  ;;  %91 = vmatpush.msra.mxu1 %v67_v10  ;;  %180 = vmatpush.msrb.mxu0 %v162_v36  ;;  %v191_v46 = vld [vmem:[#allocation3 + $0xa8] sm:$0xff]  ;;  %v190_v47 = vld [vmem:[#allocation3 + $0xa0] sm:$0xff] }
   0xf   :  { %327 = vmatmul.msk.f32.vlgmr.msra.gmra.mxu0 %vm41_vm1, %v423_v6  ;;  %121 = vmatpush.msra.mxu2 %v99_v17  ;;  %v193_v44 = vld [vmem:[#allocation3 + $0xb8] sm:$0xff]  ;;  %v269_v52 = vsel %vm257_vm4, %v423_v6, 0.0 }
  0x10   :  { %151 = vmatpush.msra.mxu3 %v129_v25  ;;  %181 = vmatpush.msrb.mxu0 %v161_v37  ;;  %v354_v48 = vld [vmem:[%s499_s2 + $0x4] ss:$0 sm:$0xff]  ;;  %v270_v53 = vsel %vm234_vm3, %v269_v52, 0.0  ;;  %v355_v54 = vld [vmem:[%s499_s2 + $0x5] ss:$0 sm:$0xff] }
  0x11   :  { %122 = vmatpush.msra.mxu2 %v98_v18  ;;  %211 = vmatpush.msrb.mxu1 %v193_v44 }
  0x12   :  { %152 = vmatpush.msra.mxu3 %v128_v26  ;;  %182 = vmatpush.msrb.mxu0 %v160_v38 }
  0x13   :  { %212 = vmatpush.msrb.mxu1 %v192_v45  ;;  %271 = vadd.xlane.f32.xlu2 %v270_v53 }
  0x14   :  { %183 = vmatpush.msrb.mxu0 %v159_v39 }
  0x15   :  { %213 = vmatpush.msrb.mxu1 %v191_v46 }
  0x17   :  { %214 = vmatpush.msrb.mxu1 %v190_v47 }
  0x86   :  { %v272_v62 = vpop.xlane.xlu2 %271 }
  0x87   :  { %v273_v3 = vrot.slane %v272_v62, 4 }
  0x89   :  { %v274_v9 = vadd.f32 %v273_v3, %v272_v62 }
  0x8b   :  { %v275_v15 = vrot.slane %v274_v9, 2 }
  0x8c   :  { %v62_v12 = vpop.f32.mrf.mxu0 }
  0x8d   :  { %v63_v13 = vadd.f32 %v350_v11, %v62_v12 }
  0x8f   :  { %356 = vtanh.f32 %v63_v13 }
  0x95   :  { %v357_v14 = vpop.eup %356 }
  0x96   :  { %328 = vmatmul.msk.f32.vlgmr.msra.gmra.mxu1 %vm41_vm1, %v357_v14 }
 0x113   :  { %v93_v22 = vpop.f32.mrf.mxu1 }
 0x114   :  { %v94_v23 = vadd.f32 %v351_v21, %v93_v22 }
 0x116   :  { %358 = vtanh.f32 %v94_v23  ;;  %v276_v23 = vadd.f32 %v275_v15, %v274_v9 }
 0x11c   :  { %v359_v24 = vpop.eup %358 }
 0x11d   :  { %329 = vmatmul.msk.f32.vlgmr.msra.gmra.mxu2 %vm41_vm1, %v359_v24 }
 0x1a0   :  { %v124_v30 = vpop.f32.mrf.mxu2 }
 0x1a1   :  { %v125_v31 = vadd.f32 %v352_v29, %v124_v30 }
 0x1a3   :  { %330 = vmatmul.msk.f32.vlgmr.msra.gmra.mxu3 %vm41_vm1, %v125_v31  ;;  %v246_v32 = vsel %vm245_vm2, %v125_v31, 0.0  ;;  %v258_v34 = vsel %vm257_vm4, %v125_v31, 0.0  ;;  %v233_v59 = vsel %vm232_vm5, %v125_v31, 0.0  ;;  %v277_v31 = vrot.slane %v276_v23, 1 }
 0x1a4   :  { %v247_v33 = vsel %vm234_vm3, %v246_v32, 0.0  ;;  %v259_v35 = vsel %vm234_vm3, %v258_v34, 0.0  ;;  %v235_v60 = vsel %vm234_vm3, %v233_v59, 0.0 }
 0x1a5   :  { %248 = vadd.xlane.f32.xlu1 %v247_v33  ;;  %v278_v37 = vadd.f32 %v277_v31, %v276_v23 }
 0x1ad   :  { %260 = vadd.xlane.f32.xlu1 %v259_v35 }
 0x218   :  { %v249_v61 = vpop.xlane.xlu1 %248 }
 0x219   :  { %v250_v1 = vrot.slane %v249_v61, 4 }
 0x21b   :  { %v251_v8 = vadd.f32 %v250_v1, %v249_v61 }
 0x21d   :  { %v252_v14 = vrot.slane %v251_v8, 2 }
 0x21f   :  { %v253_v24 = vadd.f32 %v252_v14, %v251_v8 }
 0x220   :  { %v261_v0 = vpop.xlane.xlu1 %260 }
 0x221   :  { %v262_v4 = vrot.slane %v261_v0, 4  ;;  %v254_v30 = vrot.slane %v253_v24, 1 }
 0x223   :  { %v263_v10 = vadd.f32 %v262_v4, %v261_v0  ;;  %v255_v36 = vadd.f32 %v254_v30, %v253_v24 }
 0x225   :  { %v264_v17 = vrot.slane %v263_v10, 2 }
 0x226   :  { %v154_v41 = vpop.f32.mrf.mxu3 }
 0x227   :  { %v155_v42 = vadd.f32 %v353_v40, %v154_v41  ;;  %v265_v25 = vadd.f32 %v264_v17, %v263_v10 }
 0x229   :  { %360 = vtanh.f32 %v155_v42  ;;  %v266_v33 = vrot.slane %v265_v25, 1 }
 0x22b   :  { %v267_v38 = vadd.f32 %v266_v33, %v265_v25 }
 0x22f   :  { %v361_v43 = vpop.eup %360 }
 0x230   :  { %331 = vmatmul.msk.f32.vlgmr.msrb.gmra.mxu0 %vm41_vm1, %v361_v43 }
 0x2ad   :  { %v185_v49 = vpop.f32.mrf.mxu0 }
 0x2ae   :  { %v186_v50 = vadd.f32 %v354_v48, %v185_v49 }
 0x2b0   :  { %362 = vtanh.f32 %v186_v50 }
 0x2b1   :  { %364 = vrcp.f32 %v396_v63 }
 0x2b6   :  { %v363_v51 = vpop.eup %362 }
 0x2b7   :  { %332 = vmatmul.msk.f32.vlgmr.msrb.gmra.mxu1 %vm41_vm1, %v363_v51 }
 0x334   :  { %v216_v55 = vpop.f32.mrf.mxu1 }
 0x335   :  { %v217_v56 = vadd.f32 %v355_v54, %v216_v55 }
 0x337   :  { %v219_v57 = vsub.f32 %v217_v56, %v423_v6  ;;  %v365_v6 = vpop.eup %364 }
 0x338   :  { %v297_v12 = vmul.f32 50.0, %v365_v6  ;;  %vm301_vm6 = vweird.f32 %v365_v6 }
 0x339   :  { %v220_v58 = vmul.f32 %v219_v57, %v219_v57 }
 0x33a   :  { %v298_v20 = vsub.f32 1.0, %v297_v12 }
 0x33b   :  { %221 = vadd.xlane.f32.xlu0 %v220_v58 }
 0x33c   :  { %v299_v27 = vmul.f32 %v365_v6, %v298_v20 }
 0x33e   :  { %v300_v34 = vadd.f32 %v365_v6, %v299_v27 }
 0x340   :  { %v302_v39 = vsel %vm301_vm6, %v365_v6, %v300_v34 }
 0x343   :  { %236 = vadd.xlane.f32.xlu0 %v235_v60 }
 0x3ae   :  { %v222_v2 = vpop.xlane.xlu0 %221 }
 0x3af   :  { %v223_v5 = vrot.slane %v222_v2, 4 }
 0x3b1   :  { %v224_v7 = vadd.f32 %v223_v5, %v222_v2 }
 0x3b3   :  { %v225_v11 = vrot.slane %v224_v7, 2 }
 0x3b5   :  { %v226_v13 = vadd.f32 %v225_v11, %v224_v7 }
 0x3b6   :  { %v237_v16 = vpop.xlane.xlu0 %236 }
 0x3b7   :  { %v238_v18 = vrot.slane %v237_v16, 4  ;;  %v227_v19 = vrot.slane %v226_v13, 1 }
 0x3b9   :  { %v239_v21 = vadd.f32 %v238_v18, %v237_v16  ;;  %v228_v22 = vadd.f32 %v227_v19, %v226_v13 }
 0x3bb   :  { %v240_v26 = vrot.slane %v239_v21, 2  ;;  %333 = vpush %v228_v22 }
 0x3bd   :  { %v241_v29 = vadd.f32 %v240_v26, %v239_v21 }
 0x3bf   :  { %v242_v32 = vrot.slane %v241_v29, 1 }
 0x3c1   :  { %v243_v35 = vadd.f32 %v242_v32, %v241_v29 }
 0x3c3   :  { %335 = vpush %v243_v35 }
 0x3c4   :  { %337 = vpush %v255_v36 }
 0x3c5   :  { %339 = vpush %v267_v38 }
 0x3c6   :  { %341 = vpush %v278_v37 }
 0x3c7   :  { %343 = vpush %v302_v39 }
 0x3ec   :  { %s469_s2 = spop %333 }
 0x3ed   :  { %v309_v41 = vstv %s469_s2 }
 0x3f4   :  { %s471_s4 = spop %335 }
 0x3f5   :  { %s283_s5 = smul.f32 %s471_s4, %s471_s4  ;;  %s475_s6 = spop %337  ;;  %v317_v49 = vstv %s471_s4 }
 0x3f6   :  { %s284_s7 = smul.f32 %s475_s6, %s475_s6  ;;  %s340_s8 = spop %339  ;;  %v313_v45 = vstv %s475_s6 }
 0x3f7   :  { %s280_s10 = smul.f32 %s340_s8, %s340_s8  ;;  %s342_s15 = spop %341 }
 0x3f8   :  { %s285_s9 = sadd.f32 %s284_s7, %s283_s5  ;;  %s344_s17 = spop %343  ;;  %v315_v47 = vstv %s342_s15 }
 0x3f9   :  { %s287_s11 = ssub.f32 %s283_s5, %s284_s7  ;;  %s281_s14 = sand.u32 2147483647, %s280_s10 }
 0x3fa   :  { %s286_s12 = smul.f32 %s285_s9, %s285_s9 }
 0x3fb   :  { %s288_s13 = smul.f32 0.01, %s287_s11 }
 0x3fc   :  { %s282_s18 = smul.f32 100.0, %s281_s14 }
 0x3fd   :  { %s289_s16 = ssub.f32 %s286_s12, %s288_s13  ;;  %s304_s1 = smul.f32 %s344_s17, %s469_s2 }
 0x3ff   :  { %s290_s19 = sand.u32 2147483647, %s289_s16  ;;  %v311_v44 = vstv %s304_s1 }
 0x400   :  { %s291_s20 = smul.f32 100.0, %s290_s19 }
 0x402   :  { %s292_s0 = sadd.f32 %s291_s20, %s282_s18 }
 0x404   :  { %v307_v40 = vstv %s292_s0  ;;  %s293_s21 = sadd.f32 %s469_s2, %s292_s0 }
 0x405   :  { %v308_v42 = vsel %vm306_vm7, %v307_v40, 0.0 }
 0x406   :  { %v310_v43 = vsel %vm305_vm8, %v309_v41, %v308_v42  ;;  %v319_v51 = vstv %s293_s21 }
 0x407   :  { %v312_v46 = vsel %vm295_vm9, %v311_v44, %v310_v43 }
 0x408   :  { %v314_v48 = vsel %vm294_vm10, %v313_v45, %v312_v46 }
 0x409   :  { %v316_v50 = vsel %vm257_vm4, %v315_v47, %v314_v48 }
 0x40a   :  { %v318_v52 = vsel %vm245_vm2, %v317_v49, %v316_v50 }
 0x40b   :  { %v320_v53 = vsel %vm232_vm5, %v319_v51, %v318_v52 }
 0x40c   :  { %321 = vst [vmem:[%s500_s3] sm:$0x1] %v320_v53 }
 0x40d   :  { %326 = vsyncpa [#allocation4], 1 }

</bundles_post_ra>
